<compile_context>
chip_gen: v7x
topology: tpu7x:2x2x1
jax: 0.10.0
libtpu: 0.0.40
codegen_flags: <defaults>
</compile_context>

<pallas_src>
import functools

import jax
import jax.numpy as jnp
from jax.experimental import pallas as pl
from jax.experimental.pallas import tpu as pltpu

_VMEM_LIMIT_BYTES = 32 * 1024 * 1024   # safe on v5e/v6e (128 MiB) and v7x (64 MiB)
_X_TILE_BUDGET_BYTES = 2 * 1024 * 1024  # per x buffer; x4 for double-buffered in+out


def _choose_tile_m(M, C, HW, itemsize, budget_bytes=_X_TILE_BUDGET_BYTES):
    """Largest divisor of M such that a (1, TILE_M, C, HW) block fits the budget."""
    row_bytes = max(1, C * HW * itemsize)
    max_rows = max(1, budget_bytes // row_bytes)
    tile = int(min(M, max_rows))
    while M % tile:
        tile -= 1
    return tile


def _gbn_stats_kernel(x_ref, rm_ref, rv_ref, w_ref, b_ref,
                      scale_ref, shift_ref, rm_out_ref, rv_out_ref,
                      sum_sc, sumsq_sc,
                      *, eps, momentum, n_elems):
    """Accumulate per-channel sum / sumsq over M-tiles; finalize on last tile."""
    t = pl.program_id(1)

    @pl.when(t == 0)
    def _init():
        sum_sc[...] = jnp.zeros_like(sum_sc)
        sumsq_sc[...] = jnp.zeros_like(sumsq_sc)

    # Single read of the block; single-pass statistics (sum, sum of squares).
    x = x_ref[...].astype(jnp.float32)              # (1, TILE_M, C, HW)
    sum_sc[...] += jnp.sum(x, axis=(1, 3))          # (1, C)
    sumsq_sc[...] += jnp.sum(x * x, axis=(1, 3))    # (1, C)

    @pl.when(t == pl.num_programs(1) - 1)
    def _finalize():
        n = jnp.float32(n_elems)
        mean = sum_sc[...] * (1.0 / n)                                  # (1, C)
        # Unbiased variance (torch.var default): (sumsq - n*mean^2) / (n - 1).
        var = (sumsq_sc[...] - n * mean * mean) / jnp.float32(n_elems - 1)
        inv_std = jax.lax.rsqrt(var + jnp.float32(eps))                 # EUP

        w = w_ref[0]                                                    # (1, C)
        b = b_ref[0]
        scale = inv_std * w
        shift = b - mean * scale
        scale_ref[0] = scale
        shift_ref[0] = shift

        m = jnp.float32(momentum)
        rm_out_ref[0] = rm_ref[0] * (1.0 - m) + mean * m
        rv_out_ref[0] = rv_ref[0] * (1.0 - m) + var * m


def _gbn_norm_kernel(x_ref, scale_ref, shift_ref, y_ref):
    """y = x * scale + shift (fused affine; 2 VPU ops per element)."""
    x = x_ref[...].astype(jnp.float32)   # (1, TILE_M, C, HW)
    scale = scale_ref[...]               # (1, 1, C, 1) broadcast along lanes
    shift = shift_ref[...]
    y_ref[...] = (x * scale + shift).astype(y_ref.dtype)


def gbn_forward(x, running_mean, running_var, weight, bias, *,
                micro_in_macro, eps=1e-5, momentum=0.01):
    """Forward pass of _GBN (training mode).

    x:                 (N, C, H, W)
    running_mean/var:  (G, 1, C, 1, 1) float32
    weight/bias:       (G, 1, C, 1, 1)
    returns (y, new_running_mean, new_running_var)
    """
    N, C, H, W = x.shape
    G = micro_in_macro
    M = N // G
    HW = H * W

    xg = x.reshape(G, M, C, HW)
    rm = running_mean.astype(jnp.float32).reshape(G, 1, C)
    rv = running_var.astype(jnp.float32).reshape(G, 1, C)
    w = weight.astype(jnp.float32).reshape(G, 1, C)
    b = bias.astype(jnp.float32).reshape(G, 1, C)

    tile_m = _choose_tile_m(M, C, HW, jnp.dtype(x.dtype).itemsize)
    mt = M // tile_m

    blk_x = pl.BlockSpec((1, tile_m, C, HW), lambda g, t: (g, t, 0, 0))
    blk_c = pl.BlockSpec((1, 1, C), lambda g, t: (g, 0, 0))          # lane-dense stats

    # ---------------- Pass 1: per-(group, channel) statistics -----------------
    stats_kernel = functools.partial(_gbn_stats_kernel, eps=eps,
                                     momentum=momentum, n_elems=M * HW)
    scale, shift, new_rm, new_rv = pl.pallas_call(
        stats_kernel,
        out_shape=(
            jax.ShapeDtypeStruct((G, 1, C), jnp.float32),   # scale
            jax.ShapeDtypeStruct((G, 1, C), jnp.float32),   # shift
            jax.ShapeDtypeStruct((G, 1, C), jnp.float32),   # new running mean
            jax.ShapeDtypeStruct((G, 1, C), jnp.float32),   # new running var
        ),
        grid_spec=pltpu.PrefetchScalarGridSpec(
            num_scalar_prefetch=0,
            grid=(G, mt),
            in_specs=[blk_x, blk_c, blk_c, blk_c, blk_c],
            out_specs=[blk_c, blk_c, blk_c, blk_c],
            scratch_shapes=[pltpu.VMEM((1, C), jnp.float32),
                            pltpu.VMEM((1, C), jnp.float32)],
        ),
        compiler_params=pltpu.CompilerParams(
            dimension_semantics=("parallel", "arbitrary"),
            vmem_limit_bytes=_VMEM_LIMIT_BYTES),
    )(xg, rm, rv, w, b)

    # ---------------- Pass 2: normalize with fused scale/shift ----------------
    scale4 = scale.reshape(G, 1, C, 1)   # C on sublanes to broadcast against x
    shift4 = shift.reshape(G, 1, C, 1)
    blk_s4 = pl.BlockSpec((1, 1, C, 1), lambda g, t: (g, 0, 0, 0))

    y = pl.pallas_call(
        _gbn_norm_kernel,
        out_shape=jax.ShapeDtypeStruct((G, M, C, HW), x.dtype),
        grid_spec=pltpu.PrefetchScalarGridSpec(
            num_scalar_prefetch=0,
            grid=(G, mt),
            in_specs=[blk_x, blk_s4, blk_s4],
            out_specs=blk_x,
        ),
        compiler_params=pltpu.CompilerParams(
            dimension_semantics=("parallel", "parallel"),
            vmem_limit_bytes=_VMEM_LIMIT_BYTES),
    )(xg, scale4, shift4)

    return (y.reshape(N, C, H, W),
            new_rm.reshape(G, 1, C, 1, 1),
            new_rv.reshape(G, 1, C, 1, 1))


def _gbn_reference(x, running_mean, running_var, weight, bias, *,
                   micro_in_macro, eps=1e-5, momentum=0.01):
    """Pure-JAX reference mirroring the PyTorch g_b_n (training mode)."""
    N, C, H, W = x.shape
    G = micro_in_macro
    xg = x.reshape(G, N // G, C, H, W)
    mean = jnp.mean(xg, axis=(1, 3, 4), keepdims=True)
    var = jnp.var(xg, axis=(1, 3, 4), keepdims=True, ddof=1)  # torch.var unbiased
    new_rm = running_mean * (1 - momentum) + mean * momentum
    new_rv = running_var * (1 - momentum) + var * momentum
    x_hat = (xg - mean) / jnp.sqrt(var + eps)
    x_hat = x_hat * weight + bias
    return x_hat.reshape(N, C, H, W), new_rm, new_rv


if __name__ == "__main__":
    # Small shapes consistent with the module: micro_in_macro=2 groups.
    G = 2          # opt.micro_in_macro
    N, C, H, W = 4, 4, 16, 16
    eps, momentum = 1e-5, 0.01

    key = jax.random.PRNGKey(0)
    x = jax.random.normal(key, (N, C, H, W), dtype=jnp.float32)

    # Deterministic init per reset_parameters(): weight=1, bias=0, rm=0, rv=1.
    weight = jnp.ones((G, 1, C, 1, 1), dtype=jnp.float32)
    bias = jnp.zeros((G, 1, C, 1, 1), dtype=jnp.float32)
    running_mean = jnp.zeros((G, 1, C, 1, 1), dtype=jnp.float32)
    running_var = jnp.ones((G, 1, C, 1, 1), dtype=jnp.float32)

    y, new_rm, new_rv = gbn_forward(
        x, running_mean, running_var, weight, bias,
        micro_in_macro=G, eps=eps, momentum=momentum)
    jax.block_until_ready((y, new_rm, new_rv))

    # Sanity check against pure-JAX reference.
    y_ref, rm_ref, rv_ref = _gbn_reference(
        x, running_mean, running_var, weight, bias,
        micro_in_macro=G, eps=eps, momentum=momentum)
    assert jnp.allclose(y, y_ref, atol=2e-5, rtol=2e-5), "output mismatch"
    assert jnp.allclose(new_rm.reshape(rm_ref.shape), rm_ref, atol=1e-6)
    assert jnp.allclose(new_rv.reshape(rv_ref.shape), rv_ref, atol=1e-6)

    print("KERNEL_OK")
</pallas_src>

<mosaic_0001>
module attributes {stable_mosaic.version = 11 : i64} {
  func.func @_gbn_stats_kernel(%arg0: i32, %arg1: i32, %arg2: memref<1x2x4x256xf32, #tpu.memory_space<vmem>>, %arg3: memref<1x1x4xf32, #tpu.memory_space<vmem>>, %arg4: memref<1x1x4xf32, #tpu.memory_space<vmem>>, %arg5: memref<1x1x4xf32, #tpu.memory_space<vmem>>, %arg6: memref<1x1x4xf32, #tpu.memory_space<vmem>>, %arg7: memref<1x1x4xf32, #tpu.memory_space<vmem>>, %arg8: memref<1x1x4xf32, #tpu.memory_space<vmem>>, %arg9: memref<1x1x4xf32, #tpu.memory_space<vmem>>, %arg10: memref<1x1x4xf32, #tpu.memory_space<vmem>>, %arg11: memref<1x4xf32, #tpu.memory_space<vmem>>, %arg12: memref<1x4xf32, #tpu.memory_space<vmem>>) attributes {dimension_semantics = [#tpu.dimension_semantics<parallel>, #tpu.dimension_semantics<arbitrary>], iteration_bounds = array<i64: 2, 1>, scalar_prefetch = 0 : i64, scratch_operands = 2 : i64, tpu.core_type = #tpu.core_type<tc>, window_params = [{transform_indices = @transform_0, window_bounds = array<i64: 1, 2, 4, 256>}, {transform_indices = @transform_1, window_bounds = array<i64: 1, 1, 4>}, {transform_indices = @transform_2, window_bounds = array<i64: 1, 1, 4>}, {transform_indices = @transform_3, window_bounds = array<i64: 1, 1, 4>}, {transform_indices = @transform_4, window_bounds = array<i64: 1, 1, 4>}, {transform_indices = @transform_5, window_bounds = array<i64: 1, 1, 4>}, {transform_indices = @transform_6, window_bounds = array<i64: 1, 1, 4>}, {transform_indices = @transform_7, window_bounds = array<i64: 1, 1, 4>}, {transform_indices = @transform_8, window_bounds = array<i64: 1, 1, 4>}]} {
    %c0_i32 = arith.constant 0 : i32
    %0 = arith.cmpi eq, %arg1, %c0_i32 : i32
    %1 = arith.extui %0 : i1 to i32
    %c0_i32_0 = arith.constant 0 : i32
    %2 = arith.cmpi ne, %1, %c0_i32_0 : i32
    scf.if %2 {
      %cst_15 = arith.constant 0.000000e+00 : f32
      %16 = vector.broadcast %cst_15 : f32 to vector<1x4xf32>
      %c0_16 = arith.constant 0 : index
      %c0_17 = arith.constant 0 : index
      %17 = vector.load %arg11[%c0_16, %c0_17] : memref<1x4xf32, #tpu.memory_space<vmem>>, vector<1x4xf32>
      tpu.vector_store %arg11[%c0_16, %c0_17], %16 {strides = array<i32>} : memref<1x4xf32, #tpu.memory_space<vmem>>, vector<1x4xf32>,
      %cst_18 = arith.constant 0.000000e+00 : f32
      %18 = vector.broadcast %cst_18 : f32 to vector<1x4xf32>
      %c0_19 = arith.constant 0 : index
      %c0_20 = arith.constant 0 : index
      %19 = vector.load %arg12[%c0_19, %c0_20] : memref<1x4xf32, #tpu.memory_space<vmem>>, vector<1x4xf32>
      tpu.vector_store %arg12[%c0_19, %c0_20], %18 {strides = array<i32>} : memref<1x4xf32, #tpu.memory_space<vmem>>, vector<1x4xf32>,
    } else {
    }
    %c0 = arith.constant 0 : index
    %c0_1 = arith.constant 0 : index
    %c0_2 = arith.constant 0 : index
    %c0_3 = arith.constant 0 : index
    %3 = vector.load %arg2[%c0, %c0_1, %c0_2, %c0_3] : memref<1x2x4x256xf32, #tpu.memory_space<vmem>>, vector<1x2x4x256xf32>
    %c0_4 = arith.constant 0 : index
    %c0_5 = arith.constant 0 : index
    %4 = vector.load %arg11[%c0_4, %c0_5] : memref<1x4xf32, #tpu.memory_space<vmem>>, vector<1x4xf32>
    %cst = arith.constant dense<0.000000e+00> : vector<1x4xf32>
    %5 = vector.multi_reduction <add>, %3, %cst [1, 3] : vector<1x2x4x256xf32> to vector<1x4xf32>
    %6 = arith.addf %4, %5 : vector<1x4xf32>
    %c0_6 = arith.constant 0 : index
    %c0_7 = arith.constant 0 : index
    %7 = vector.load %arg11[%c0_6, %c0_7] : memref<1x4xf32, #tpu.memory_space<vmem>>, vector<1x4xf32>
    tpu.vector_store %arg11[%c0_6, %c0_7], %6 {strides = array<i32>} : memref<1x4xf32, #tpu.memory_space<vmem>>, vector<1x4xf32>,
    %c0_8 = arith.constant 0 : index
    %c0_9 = arith.constant 0 : index
    %8 = vector.load %arg12[%c0_8, %c0_9] : memref<1x4xf32, #tpu.memory_space<vmem>>, vector<1x4xf32>
    %9 = arith.mulf %3, %3 : vector<1x2x4x256xf32>
    %cst_10 = arith.constant dense<0.000000e+00> : vector<1x4xf32>
    %10 = vector.multi_reduction <add>, %9, %cst_10 [1, 3] : vector<1x2x4x256xf32> to vector<1x4xf32>
    %11 = arith.addf %8, %10 : vector<1x4xf32>
    %c0_11 = arith.constant 0 : index
    %c0_12 = arith.constant 0 : index
    %12 = vector.load %arg12[%c0_11, %c0_12] : memref<1x4xf32, #tpu.memory_space<vmem>>, vector<1x4xf32>
    tpu.vector_store %arg12[%c0_11, %c0_12], %11 {strides = array<i32>} : memref<1x4xf32, #tpu.memory_space<vmem>>, vector<1x4xf32>,
    %c0_i32_13 = arith.constant 0 : i32
    %13 = arith.cmpi eq, %arg1, %c0_i32_13 : i32
    %14 = arith.extui %13 : i1 to i32
    %c0_i32_14 = arith.constant 0 : i32
    %15 = arith.cmpi ne, %14, %c0_i32_14 : i32
    scf.if %15 {
      %c0_15 = arith.constant 0 : index
      %c0_16 = arith.constant 0 : index
      %16 = vector.load %arg11[%c0_15, %c0_16] : memref<1x4xf32, #tpu.memory_space<vmem>>, vector<1x4xf32>
      %cst_17 = arith.constant 1.000000e+00 : f32
      %cst_18 = arith.constant 5.120000e+02 : f32
      %17 = arith.divf %cst_17, %cst_18 : f32
      %18 = vector.broadcast %17 : f32 to vector<1x4xf32>
      %19 = arith.mulf %16, %18 : vector<1x4xf32>
      %c0_19 = arith.constant 0 : index
      %c0_20 = arith.constant 0 : index
      %20 = vector.load %arg12[%c0_19, %c0_20] : memref<1x4xf32, #tpu.memory_space<vmem>>, vector<1x4xf32>
      %cst_21 = arith.constant 5.120000e+02 : f32
      %21 = vector.broadcast %cst_21 : f32 to vector<1x4xf32>
      %22 = arith.mulf %21, %19 : vector<1x4xf32>
      %23 = arith.mulf %22, %19 : vector<1x4xf32>
      %24 = arith.subf %20, %23 : vector<1x4xf32>
      %cst_22 = arith.constant 5.110000e+02 : f32
      %25 = vector.broadcast %cst_22 : f32 to vector<1x4xf32>
      %26 = arith.divf %24, %25 : vector<1x4xf32>
      %cst_23 = arith.constant 9.99999974E-6 : f32
      %27 = vector.broadcast %cst_23 : f32 to vector<1x4xf32>
      %28 = arith.addf %26, %27 : vector<1x4xf32>
      %29 = math.rsqrt %28 : vector<1x4xf32>
      %c0_24 = arith.constant 0 : index
      %c0_25 = arith.constant 0 : index
      %c0_26 = arith.constant 0 : index
      %30 = vector.load %arg5[%c0_24, %c0_25, %c0_26] : memref<1x1x4xf32, #tpu.memory_space<vmem>>, vector<1x1x4xf32>
      %31 = vector.shape_cast %30 : vector<1x1x4xf32> to vector<1x4xf32>
      %c0_27 = arith.constant 0 : index
      %c0_28 = arith.constant 0 : index
      %c0_29 = arith.constant 0 : index
      %32 = vector.load %arg6[%c0_27, %c0_28, %c0_29] : memref<1x1x4xf32, #tpu.memory_space<vmem>>, vector<1x1x4xf32>
      %33 = vector.shape_cast %32 : vector<1x1x4xf32> to vector<1x4xf32>
      %34 = arith.mulf %29, %31 : vector<1x4xf32>
      %35 = arith.mulf %19, %34 : vector<1x4xf32>
      %36 = arith.subf %33, %35 : vector<1x4xf32>
      %c0_30 = arith.constant 0 : index
      %c0_31 = arith.constant 0 : index
      %c0_32 = arith.constant 0 : index
      %37 = vector.load %arg7[%c0_30, %c0_31, %c0_32] : memref<1x1x4xf32, #tpu.memory_space<vmem>>, vector<1x1x4xf32>
      %38 = vector.shape_cast %37 : vector<1x1x4xf32> to vector<1x4xf32>
      %39 = vector.shape_cast %34 : vector<1x4xf32> to vector<1x1x4xf32>
      tpu.vector_store %arg7[%c0_30, %c0_31, %c0_32], %39 {strides = array<i32>} : memref<1x1x4xf32, #tpu.memory_space<vmem>>, vector<1x1x4xf32>,
      %c0_33 = arith.constant 0 : index
      %c0_34 = arith.constant 0 : index
      %c0_35 = arith.constant 0 : index
      %40 = vector.load %arg8[%c0_33, %c0_34, %c0_35] : memref<1x1x4xf32, #tpu.memory_space<vmem>>, vector<1x1x4xf32>
      %41 = vector.shape_cast %40 : vector<1x1x4xf32> to vector<1x4xf32>
      %42 = vector.shape_cast %36 : vector<1x4xf32> to vector<1x1x4xf32>
      tpu.vector_store %arg8[%c0_33, %c0_34, %c0_35], %42 {strides = array<i32>} : memref<1x1x4xf32, #tpu.memory_space<vmem>>, vector<1x1x4xf32>,
      %c0_36 = arith.constant 0 : index
      %c0_37 = arith.constant 0 : index
      %c0_38 = arith.constant 0 : index
      %43 = vector.load %arg3[%c0_36, %c0_37, %c0_38] : memref<1x1x4xf32, #tpu.memory_space<vmem>>, vector<1x1x4xf32>
      %44 = vector.shape_cast %43 : vector<1x1x4xf32> to vector<1x4xf32>
      %cst_39 = arith.constant 1.000000e+00 : f32
      %cst_40 = arith.constant 0.00999999977 : f32
      %45 = arith.subf %cst_39, %cst_40 : f32
      %46 = vector.broadcast %45 : f32 to vector<1x4xf32>
      %47 = arith.mulf %44, %46 : vector<1x4xf32>
      %cst_41 = arith.constant 0.00999999977 : f32
      %48 = vector.broadcast %cst_41 : f32 to vector<1x4xf32>
      %49 = arith.mulf %19, %48 : vector<1x4xf32>
      %50 = arith.addf %47, %49 : vector<1x4xf32>
      %c0_42 = arith.constant 0 : index
      %c0_43 = arith.constant 0 : index
      %c0_44 = arith.constant 0 : index
      %51 = vector.load %arg9[%c0_42, %c0_43, %c0_44] : memref<1x1x4xf32, #tpu.memory_space<vmem>>, vector<1x1x4xf32>
      %52 = vector.shape_cast %51 : vector<1x1x4xf32> to vector<1x4xf32>
      %53 = vector.shape_cast %50 : vector<1x4xf32> to vector<1x1x4xf32>
      tpu.vector_store %arg9[%c0_42, %c0_43, %c0_44], %53 {strides = array<i32>} : memref<1x1x4xf32, #tpu.memory_space<vmem>>, vector<1x1x4xf32>,
      %c0_45 = arith.constant 0 : index
      %c0_46 = arith.constant 0 : index
      %c0_47 = arith.constant 0 : index
      %54 = vector.load %arg4[%c0_45, %c0_46, %c0_47] : memref<1x1x4xf32, #tpu.memory_space<vmem>>, vector<1x1x4xf32>
      %55 = vector.shape_cast %54 : vector<1x1x4xf32> to vector<1x4xf32>
      %cst_48 = arith.constant 1.000000e+00 : f32
      %cst_49 = arith.constant 0.00999999977 : f32
      %56 = arith.subf %cst_48, %cst_49 : f32
      %57 = vector.broadcast %56 : f32 to vector<1x4xf32>
      %58 = arith.mulf %55, %57 : vector<1x4xf32>
      %cst_50 = arith.constant 0.00999999977 : f32
      %59 = vector.broadcast %cst_50 : f32 to vector<1x4xf32>
      %60 = arith.mulf %26, %59 : vector<1x4xf32>
      %61 = arith.addf %58, %60 : vector<1x4xf32>
      %c0_51 = arith.constant 0 : index
      %c0_52 = arith.constant 0 : index
      %c0_53 = arith.constant 0 : index
      %62 = vector.load %arg10[%c0_51, %c0_52, %c0_53] : memref<1x1x4xf32, #tpu.memory_space<vmem>>, vector<1x1x4xf32>
      %63 = vector.shape_cast %62 : vector<1x1x4xf32> to vector<1x4xf32>
      %64 = vector.shape_cast %61 : vector<1x4xf32> to vector<1x1x4xf32>
      tpu.vector_store %arg10[%c0_51, %c0_52, %c0_53], %64 {strides = array<i32>} : memref<1x1x4xf32, #tpu.memory_space<vmem>>, vector<1x1x4xf32>,
    } else {
    }
    return
  }
  func.func @transform_0(%arg0: i32, %arg1: i32) -> (i32, i32, i32, i32) {
    %c0_i32 = arith.constant 0 : i32
    %c0_i32_0 = arith.constant 0 : i32
    %c0_i32_1 = arith.constant 0 : i32
    return %arg0, %arg1, %c0_i32, %c0_i32_0 : i32, i32, i32, i32
  }
  func.func @transform_1(%arg0: i32, %arg1: i32) -> (i32, i32, i32) {
    %c0_i32 = arith.constant 0 : i32
    %c0_i32_0 = arith.constant 0 : i32
    %c0_i32_1 = arith.constant 0 : i32
    return %arg0, %c0_i32, %c0_i32_0 : i32, i32, i32
  }
  func.func @transform_2(%arg0: i32, %arg1: i32) -> (i32, i32, i32) {
    %c0_i32 = arith.constant 0 : i32
    %c0_i32_0 = arith.constant 0 : i32
    %c0_i32_1 = arith.constant 0 : i32
    return %arg0, %c0_i32, %c0_i32_0 : i32, i32, i32
  }
  func.func @transform_3(%arg0: i32, %arg1: i32) -> (i32, i32, i32) {
    %c0_i32 = arith.constant 0 : i32
    %c0_i32_0 = arith.constant 0 : i32
    %c0_i32_1 = arith.constant 0 : i32
    return %arg0, %c0_i32, %c0_i32_0 : i32, i32, i32
  }
  func.func @transform_4(%arg0: i32, %arg1: i32) -> (i32, i32, i32) {
    %c0_i32 = arith.constant 0 : i32
    %c0_i32_0 = arith.constant 0 : i32
    %c0_i32_1 = arith.constant 0 : i32
    return %arg0, %c0_i32, %c0_i32_0 : i32, i32, i32
  }
  func.func @transform_5(%arg0: i32, %arg1: i32) -> (i32, i32, i32) {
    %c0_i32 = arith.constant 0 : i32
    %c0_i32_0 = arith.constant 0 : i32
    %c0_i32_1 = arith.constant 0 : i32
    return %arg0, %c0_i32, %c0_i32_0 : i32, i32, i32
  }
  func.func @transform_6(%arg0: i32, %arg1: i32) -> (i32, i32, i32) {
    %c0_i32 = arith.constant 0 : i32
    %c0_i32_0 = arith.constant 0 : i32
    %c0_i32_1 = arith.constant 0 : i32
    return %arg0, %c0_i32, %c0_i32_0 : i32, i32, i32
  }
  func.func @transform_7(%arg0: i32, %arg1: i32) -> (i32, i32, i32) {
    %c0_i32 = arith.constant 0 : i32
    %c0_i32_0 = arith.constant 0 : i32
    %c0_i32_1 = arith.constant 0 : i32
    return %arg0, %c0_i32, %c0_i32_0 : i32, i32, i32
  }
  func.func @transform_8(%arg0: i32, %arg1: i32) -> (i32, i32, i32) {
    %c0_i32 = arith.constant 0 : i32
    %c0_i32_0 = arith.constant 0 : i32
    %c0_i32_1 = arith.constant 0 : i32
    return %arg0, %c0_i32, %c0_i32_0 : i32, i32, i32
  }
}

</mosaic_0001>

<bundles_post_ra>
// kernel: tpu_custom_call.1
= control target key start
LH: loop header
LB: loop body
LE: loop exit
PB: predicated region body
PF: predicated region fallthrough
CT: control target
= control target key end

     0   :  { %s1591_s0 = inlined_call_operand.hbm [shape: f32[2,2,4,256], index: 0, kind: input, shape index: {}]   ;;  %s1592_s1 = inlined_call_operand.vmem [shape: f32[2,1,4], index: 1, kind: input, shape index: {}]   ;;  %s1593_s2 = inlined_call_operand.vmem [shape: f32[2,1,4], index: 2, kind: input, shape index: {}]   ;;  %s1594_s3 = inlined_call_operand.vmem [shape: f32[2,1,4], index: 3, kind: input, shape index: {}]   ;;  %s1595_s4 = inlined_call_operand.vmem [shape: f32[2,1,4], index: 4, kind: input, shape index: {}]   ;;  %s1596_s5 = inlined_call_operand.hbm [shape: f32[2,1,4], index: 5, kind: output, shape index: {0}]   ;;  %s1597_s6 = inlined_call_operand.hbm [shape: f32[2,1,4], index: 6, kind: output, shape index: {1}]   ;;  %s1598_s7 = inlined_call_operand.hbm [shape: f32[2,1,4], index: 7, kind: output, shape index: {2}]   ;;  %s1599_s8 = inlined_call_operand.hbm [shape: f32[2,1,4], index: 8, kind: output, shape index: {3}]  }
   0x1   :  { %1604 = sst [smem:[#allocation18_spill]] %s1591_s0 }
   0x2   :  { %1605 = sst [smem:[#allocation19_spill]] %s1592_s1 }
   0x3   :  { %1606 = sst [smem:[#allocation20_spill]] %s1593_s2 }
   0x4   :  { %1607 = sst [smem:[#allocation21_spill]] %s1599_s8 }
   0x5   :  { %14 = vsyncpa [#allocation5], 0 }
   0x6   :  { %16 = vsyncpa [#allocation5 + $0x1], 0 }
   0x7   :  { %17 = vsyncpa [#allocation6], 0 }
   0x8   :  { %19 = vsyncpa [#allocation6 + $0x1], 0 }
   0x9   :  { %20 = vsyncpa [#allocation9], 0 }
   0xa   :  { %22 = vsyncpa [#allocation9 + $0x1], 0 }
   0xb   :  { %23 = vsyncpa [#allocation12], 0 }
   0xc   :  { %25 = vsyncpa [#allocation12 + $0x1], 0  ;;  %s1252_s27 = smov 0   ;;  %s1254_s28 = smov 0  }
   0xd   :  { %s1256_s29 = smov 0   ;;  %s1258_s30 = smov 0  }
   0xe   :  { %s1260_s9 = smov 0   ;;  %s1262_s10 = smov 0  }
   0xf LB: > { %s1283_s11 = sadd.s32 4294967295, %s1195_s10   ;;  %s1600_s12 = sadd.s32 4294967294, %s1195_s10   ;;  %s1195_s10 = sphi %s1262_s10, %s31_s10   ;;  %s1191_s9 = sphi %s1260_s9, %s1629_s9   ;;  %s1187_s30 = sphi %s1258_s30, %s1628_s30   ;;  %s1183_s29 = sphi %s1256_s29, %s1627_s29   ;;  %s1179_s28 = sphi %s1254_s28, %s1626_s28   ;;  %s1175_s27 = sphi %s1252_s27, %s1625_s27  }
  0x10   : > { %s43_s13 = sadd.s32 1, %s1191_s9  ;;  %s52_s14 = sadd.s32 1, %s1183_s29 }
  0x11   : > { %p45_p0 = scmp.ge.s32.totalorder %s43_s13, 2  ;;  %p59_p1 = scmp.ne.s32.totalorder %s1183_s29, %s1179_s28 }
  0x12   : > { %p60_p2 = scmp.eq.s32.totalorder %s1195_s10, 0  ;;  %p65_p3 = scmp.ne.s32.totalorder %s1179_s28, %s1175_s27 }
  0x13   : > { %s1631_s13 = smov (%p45_p0, %s43_s13), 0  ;;  %p66_p5 = scmp.eq.s32.totalorder %s1283_s11, 0 }
  0x14   : > { %1608 = sst [smem:[#allocation17_spill]] %s1631_s13  ;;  %p1295_p4 = por %p60_p2, %p59_p1 }
  0x15   : > { %s47_s16 = ssub.s32 %s1191_s9, %s1631_s13  ;;  %p193_p6 = scmp.eq.s32.totalorder %s1283_s11, 1 }
  0x16   : > { %p50_p7 = scmp.eq.s32.totalorder %s47_s16, 0  ;;  %p1303_p8 = por %p66_p5, %p65_p3 }
  0x17   : > { %p1307_p9 = por %p193_p6, %p59_p1  ;;  %p199_p10 = scmp.eq.s32.totalorder %s1600_s12, 1 }
  0x18   : > { %s1314_s19 = scalar_select %p50_p7, %s1183_s29, %s52_s14  }
  0x19   : > { %s1611_s18 = scalar_select %p1307_p9, 1, 0 }
  0x1a   : > { %p1316_p11 = por %p199_p10, %p65_p3  ;;  %p930_p13 = scmp.lt.s32.totalorder %s1195_s10, 2 }
  0x1b   : > { %s297_s21 = sand.u32 1, %s1183_s29   ;;  %s902_s23 = sshll.u32 %s1191_s9, 8 }
  0x1c   : > { %s1612_s20 = scalar_select %p1316_p11, 1, 0 }
  0x1d   : > { %s891_s22 = sshll.u32 %s297_s21, 4  ;;  %s1613_s0 = sld [smem:[#allocation18_spill]] }
  0x1e   : > { %s301_s14 = scalar_lea.vmem [#allocation4], %s891_s22  ;;  %p1333_p0 = pnand %p930_p13, %p1295_p4 }
  0x1f   : > { %s311_s16 = sshll.u32 %s301_s14, 4  ;;  %s1338_s13 = scalar_lea.sflag [#allocation5], %s297_s21  ;;  %s1329_s16 = int_to_ptr.vmem [resolvable:$true] %s311_s16 }
  0x20   : > { %p993_p3 = pneg %p1333_p0 }
  0x23   : > { %s1327_s26 = scalar_lea.hbm %s1613_s0, %s902_s23  ;;  %s996_s15 = scalar_lea.hbm %s1613_s0, 512 }
  0x24   : > { %s991_s23 = scalar_lea.hbm %s1327_s26, 256  ;;  %p997_p4 = scmp.lt.u32.totalorder %s1327_s26, %s1613_s0 }
  0x25   : > { %p992_p2 = scmp.ne.s32.totalorder %s1327_s26, %s991_s23  ;;  %p998_p7 = scmp.lt.u32.totalorder %s996_s15, %s991_s23 }
  0x26   : > { %p1000_p13 = scmp.lt.u32.totalorder %s991_s23, %s1327_s26 }
  0x27   : > { %p994_p5 = pnand %p993_p3, %p992_p2  ;;  %p999_p10 = por %p998_p7, %p997_p4 }
  0x29   : > { %p995_p6 = pneg %p994_p5  ;;  %p1001_p12 = por %p1000_p13, %p999_p10 }
  0x2b   : > { %p1002_p1 = pnand %p1001_p12, %p995_p6 }
  0x2d   : > { %1005 = shalt.err (!%p1002_p1)
}
  0x2e   : > { %s1006_s21 = scalar_lea.vmem %s1329_s16, 256  ;;  %s1197_s22 = smov [#allocation4]  }
  0x2f   : > { %p1007_p2 = scmp.ne.s32.totalorder %s1329_s16, %s1006_s21  ;;  %s1011_s24 = sshll.u32 %s1197_s22, 4  ;;  %s1012_s24 = int_to_ptr.vmem [resolvable:$false] %s1011_s24 }
  0x30   : > { %s1013_s25 = scalar_lea.vmem %s1012_s24, 512  ;;  %p1014_p9 = scmp.lt.s32.totalorder %s1329_s16, %s1012_s24 }
  0x31   : > { %p1009_p5 = pnand %p1007_p2, %p993_p3  ;;  %p1015_p4 = scmp.lt.s32.totalorder %s1013_s25, %s1006_s21 }
  0x33   : > { %p1010_p11 = pneg %p1009_p5  ;;  %p1016_p7 = por %p1015_p4, %p1014_p9 }
  0x35   : > { %p1017_p10 = pnand %p1016_p7, %p1010_p11 }
  0x37   : > { %1020 = shalt.err (!%p1017_p10)
}
  0x38   : > { %s1198_s23 = smov 128   ;;  %s1199_s15 = smov 8  }
  0x39   : > { %916 = dma.hbm_to_vmem [thread:$0]  (!%p1333_p0), %s1327_s26, 256, %s1329_s16, %s1338_s13, %s1198_s23, %s1198_s23, %s1199_s15  }
  0x3a   : > { %p343_p12 = scmp.lt.s32.totalorder %s1195_s10, 3  ;;  %p1615_p1 = scmp.ge.s32.totalorder %s1195_s10, 1 }
  0x3c   : > { %p344_p3 = pnand %p1615_p1, %p343_p12 }
  0x3d   : > { %s1370_s14 = sand.u32 (!%p344_p3), 1, %s1179_s28  }
  0x3e   : > { %347 = sbr.rel (%p344_p3) target bundleno = 479 (0x1df), region = 40  ;;  %s895_s21 = sshll.u32 (!%p344_p3), %s1370_s14, 4 }
  0x3f   : > { %s350_s22 = scalar_lea.sflag (!%p344_p3), [#allocation5], %s1370_s14  ;;  %s353_s24 = scalar_lea.vmem (!%p344_p3), [#allocation4], %s895_s21 }
  0x45   : > { %1158 = dma.done.wait (%p1303_p8), %s350_s22, 256  }
  0x46   : > { %1160 = vsyncadd (%p1303_p8), %s350_s22, 4294967040  ;;  %vm438_vm0 = vcmask 1043456   ;;  %v429_v0 = vld [vmem:[%s353_s24] sm:$0xff]  ;;  %v430_v1 = vld [vmem:[%s353_s24 + $0x8] sm:$0xff]  ;;  %v1200_v22 = vmov 0   ;;  %v449_v23 = vlaneseq  ;;  %vm426_vm1 = vcmask 24576  }
  0x47   : > { %v434_v2 = vcombine.high %v429_v0, %v429_v0  ;;  %v435_v3 = vcombine.high %v430_v1, %v430_v1  ;;  %v439_v4 = vsel %vm438_vm0, %v429_v0, 0.0  ;;  %v517_v5 = vmul.f32 %v429_v0, %v429_v0  ;;  %985 = vset.pattern.permute.xlu1 %v1200_v22  ;;  %986 = vset.pattern.permute.xlu0 %v1200_v22  ;;  %p410_p8 = scmp.lt.s32.totalorder %s1187_s30, 1  ;;  %s1616_s1 = sld [smem:[#allocation19_spill]] }
  0x48   : > { %v518_v6 = vmul.f32 %v430_v1, %v430_v1  ;;  %v442_v8 = vsel %vm438_vm0, %v430_v1, 0.0  ;;  %v450_v24 = vshrl.u32 %v449_v23, 7  ;;  %v493_v25 = vand.u32 127, %v449_v23  ;;  %s1617_s2 = sld [smem:[#allocation20_spill]]  ;;  %s1603_s15 = scalar_lea.vmem [#allocation10], %s1370_s14 }
  0x49   : > { %v440_v7 = vsel %vm438_vm0, %v434_v2, 0.0  ;;  %v521_v10 = vcombine.high %v517_v5, %v517_v5  ;;  %v525_v12 = vsel %vm438_vm0, %v517_v5, 0.0  ;;  %v444_v13 = vsel %vm438_vm0, %v435_v3, 0.0  ;;  %s1390_s12 = scalar_select %p410_p8, %s1187_s30, 1 }
  0x4a   : > { %v441_v9 = vadd.f32 %v440_v7, %v439_v4  ;;  %v522_v11 = vcombine.high %v518_v6, %v518_v6  ;;  %v528_v16 = vsel %vm438_vm0, %v518_v6, 0.0  ;;  %v1201_v26 = vmov 0.0   ;;  %s1412_s21 = sshll.u32 %s1187_s30, 4  ;;  %s408_s22 = scalar_lea.vmem [#allocation11], %s1370_s14 }
  0x4b   : > { %v526_v15 = vsel %vm438_vm0, %v521_v10, 0.0  ;;  %427 = vst.msk [vmem:[#allocation2] sm:$0x1] %vm426_vm1, %v1201_v26  ;;  %428 = vst.msk [vmem:[#allocation3] sm:$0x1] %vm426_vm1, %v1201_v26  ;;  %v496_v27 = vsub.s32 %v493_v25, %v450_v24  ;;  %v451_v30 = vsub.s32 0, %v450_v24 }
  0x4c   : > { %v443_v14 = vadd.f32 %v442_v8, %v441_v9  ;;  %v527_v17 = vadd.f32 %v526_v15, %v525_v12  ;;  %v530_v19 = vsel %vm438_vm0, %v522_v11, 0.0  ;;  %v1202_v28 = vmov 1966171168   ;;  %s693_s24 = sshll.u32 %s408_s22, 4  ;;  %s1618_s8 = sld [smem:[#allocation21_spill]]  ;;  %s1421_s24 = int_to_ptr.vmem [resolvable:$true] %s693_s24 }
  0x4d   : > { %v468_v29 = vunpack.c.l.s4 %v1202_v28  ;;  %v455_v31 = vsub.s32 1, %v450_v24  ;;  %v459_v32 = vsub.s32 2, %v450_v24  ;;  %v463_v33 = vsub.s32 3, %v450_v24  ;;  %s412_s26 = scalar_lea.vmem %s1616_s1, %s1390_s12  ;;  %s642_s30 = scalar_lea.sflag [#allocation12], %s1370_s14 }
  0x4e   : > { %v445_v18 = vadd.f32 %v444_v13, %v443_v14  ;;  %v529_v20 = vadd.f32 %v528_v16, %v527_v17  ;;  %v619_v6 = vld [vmem:[%s412_s26] sm:$0x1]  ;;  %s415_s23 = scalar_lea.vmem %s1617_s2, %s1390_s12  ;;  %s1021_s16 = scalar_lea.vmem %s1421_s24, 16 }
  0x4f   : > { %v469_v34 = vunpack.c.0.s8 %v468_v29  ;;  %v620_v9 = vmul.f32 0.99, %v619_v6  ;;  %v624_v15 = vld [vmem:[%s415_s23] sm:$0x1]  ;;  %p1022_p9 = scmp.ne.s32.totalorder %s1421_s24, %s1021_s16  ;;  %p1619_p11 = scmp.ne.s32.totalorder %s1611_s18, 0 }
  0x50   : > { %446 = vadd.xlane.f32.xlu0 %v445_v18  ;;  %v531_v21 = vadd.f32 %v530_v19, %v529_v20  ;;  %v625_v18 = vmul.f32 0.99, %v624_v15  ;;  %s1203_s25 = smov [#allocation11]  }
  0x51   : > { %v472_v40 = vsub.s32 %v469_v34, %v450_v24  ;;  %p1023_p0 = pnand %p1022_p9, %p1619_p11  ;;  %s1025_s23 = sshll.u32 %s1203_s25, 4  ;;  %s1026_s23 = int_to_ptr.vmem [resolvable:$false] %s1025_s23 }
  0x52   : > { %v431_v61 = vld [vmem:[#allocation2] sm:$0x1]  ;;  %v516_v3 = vld [vmem:[#allocation3] sm:$0x1]  ;;  %s1419_s26 = scalar_lea.hbm %s1618_s8, %s1412_s21  ;;  %p1028_p13 = scmp.lt.s32.totalorder %s1421_s24, %s1026_s23 }
  0x53   : > { %p1024_p6 = pneg %p1023_p0 }
  0x54   : > { %532 = vadd.xlane.f32.xlu0 %v531_v21 }
  0xdd   : > { %v447_v35 = vpop.xlane.xlu0 %446 }
  0xde   : > { %v452_v36 = vrot.slane %v447_v35, %v451_v30  ;;  %v456_v37 = vrot.slane %v447_v35, %v455_v31  ;;  %v460_v38 = vrot.slane %v447_v35, %v459_v32  ;;  %v464_v39 = vrot.slane %v447_v35, %v463_v33 }
  0xe0   : > { %v465_v41 = vcombine.low %v452_v36, %v456_v37  ;;  %v466_v42 = vcombine.low %v460_v38, %v464_v39 }
  0xe1   : > { %v533_v43 = vpop.xlane.xlu0 %532 }
  0xe2   : > { %v538_v44 = vrot.slane %v533_v43, %v451_v30  ;;  %v542_v45 = vrot.slane %v533_v43, %v455_v31  ;;  %v546_v46 = vrot.slane %v533_v43, %v459_v32  ;;  %v550_v47 = vrot.slane %v533_v43, %v463_v33 }
  0xe3   : > { %v473_v48 = vrot.slane %v465_v41, %v472_v40  ;;  %v480_v49 = vrot.slane %v466_v42, %v472_v40 }
  0xe4   : > { %v551_v50 = vcombine.low %v538_v44, %v542_v45  ;;  %v552_v51 = vcombine.low %v546_v46, %v550_v47 }
  0xe5   : > { %v481_v52 = vcombine.low %v473_v48, %v480_v49 }
  0xe6   : > { %v559_v53 = vrot.slane %v551_v50, %v472_v40  ;;  %v566_v54 = vrot.slane %v552_v51, %v472_v40 }
  0xe7   : > { %v488_v55 = vrot.slane %v481_v52, %v472_v40 }
  0xe8   : > { %v567_v56 = vcombine.low %v559_v53, %v566_v54 }
  0xe9   : > { %490 = vperm.xlu1 %985, %v488_v55  }
  0xea   : > { %v574_v57 = vrot.slane %v567_v56, %v472_v40 }
  0xed   : > { %576 = vperm.xlu1 %985, %v574_v57  }
 0x168   : > { %v491_v58 = vpop.permute.xlu1 %490 }
 0x169   : > { %v497_v59 = vrot.slane %v491_v58, %v496_v27 }
 0x16b   : > { %v504_v60 = vrot.slane %v497_v59, %v472_v40 }
 0x16c   : > { %v577_v62 = vpop.permute.xlu1 %576 }
 0x16d   : > { %v511_v63 = vrot.slane %v504_v60, %v472_v40  ;;  %v581_v0 = vrot.slane %v577_v62, %v496_v27 }
 0x16f   : > { %v513_v1 = vadd.f32 %v511_v63, %v431_v61  ;;  %v588_v2 = vrot.slane %v581_v0, %v472_v40 }
 0x171   : > { %515 = vst.msk [vmem:[#allocation2] sm:$0x1] %vm426_vm1, %v513_v1  ;;  %v595_v4 = vrot.slane %v588_v2, %v472_v40 }
 0x173   : > { %v597_v5 = vadd.f32 %v595_v4, %v516_v3 }
 0x175   : > { %598 = vst.msk [vmem:[#allocation3] sm:$0x1] %vm426_vm1, %v597_v5 }
 0x178   : > { %v602_v7 = vld [vmem:[#allocation2] sm:$0x1] }
 0x179   : > { %v1398_v8 = vmul.f32 0.001953125, %v602_v7 }
 0x17b   : > { %v605_v10 = vmul.f32 512.0, %v1398_v8  ;;  %v621_v11 = vmul.f32 0.01, %v1398_v8 }
 0x17c   : > { %v604_v14 = vld [vmem:[#allocation3] sm:$0x1] }
 0x17d   : > { %v606_v12 = vmul.f32 %v605_v10, %v1398_v8  ;;  %v622_v13 = vadd.f32 %v621_v11, %v620_v9 }
 0x17f   : > { %v607_v16 = vsub.f32 %v604_v14, %v606_v12  ;;  %623 = vst.msk [vmem:[%s1603_s15] sm:$0x1] %vm426_vm1, %v622_v13  ;;  %s1027_s15 = scalar_lea.vmem %s1026_s23, 32 }
 0x180   : > { %p1029_p2 = scmp.lt.s32.totalorder %s1027_s15, %s1021_s16 }
 0x181   : > { %v609_v17 = vmul.f32 0.0019569471, %v607_v16 }
 0x182   : > { %p1030_p5 = por %p1029_p2, %p1028_p13 }
 0x183   : > { %v610_v19 = vadd.f32 1e-05, %v609_v17  ;;  %v626_v20 = vmul.f32 0.01, %v609_v17 }
 0x184   : > { %p1031_p4 = pnand %p1030_p5, %p1024_p6 }
 0x185   : > { %989 = vrsqrt.f32 %v610_v19  ;;  %v627_v21 = vadd.f32 %v626_v20, %v625_v18 }
 0x187   : > { %628 = vst.msk [vmem:[%s408_s22] sm:$0x1] %vm426_vm1, %v627_v21 }
 0x188   : > { %1034 = shalt.err (!%p1031_p4)
}
 0x189   : > { %s1035_s22 = scalar_lea.hbm %s1419_s26, 16  ;;  %s1039_s25 = scalar_lea.hbm %s1618_s8, 32 }
 0x18a   : > { %p1036_p7 = scmp.ne.s32.totalorder %s1419_s26, %s1035_s22  ;;  %p1040_p1 = scmp.lt.u32.totalorder %s1419_s26, %s1618_s8 }
 0x18b   : > { %p1041_p3 = scmp.lt.u32.totalorder %s1039_s25, %s1035_s22  ;;  %p1043_p9 = scmp.lt.u32.totalorder %s1035_s22, %s1419_s26 }
 0x18c   : > { %p1037_p10 = pnand %p1036_p7, %p1619_p11 }
 0x18d   : > { %p1042_p8 = por %p1041_p3, %p1040_p1 }
 0x18e   : > { %p1038_p12 = pneg %p1037_p10 }
 0x18f   : > { %p1044_p0 = por %p1043_p9, %p1042_p8 }
 0x191   : > { %p1045_p6 = pnand %p1044_p0, %p1038_p12 }
 0x193   : > { %1048 = shalt.err (!%p1045_p6)
}
 0x194   : > { %908 = dma.vmem_to_hbm [thread:$0]  (%p1619_p11), %s1421_s24, 16, %s1419_s26, %s642_s30   ;;  %v990_v23 = vpop.eup %989 }
 0x195   : > { %s418_s16 = scalar_lea.vmem %s1594_s3, %s1390_s12  ;;  %s390_s22 = scalar_lea.vmem [#allocation7], %s1370_s14 }
 0x196   : > { %v612_v22 = vld [vmem:[%s418_s16] sm:$0x1]  ;;  %s654_s13 = sshll.u32 %s390_s22, 4  ;;  %s421_s23 = scalar_lea.vmem %s1595_s4, %s1390_s12  ;;  %s1462_s13 = int_to_ptr.vmem [resolvable:$true] %s654_s13 }
 0x197   : > { %s633_s1 = sand.u32 1, %s1283_s11   ;;  %v614_v24 = vmul.f32 %v990_v23, %v612_v22  ;;  %s1460_s24 = scalar_lea.hbm %s1596_s5, %s1412_s21  ;;  %v613_v25 = vld [vmem:[%s421_s23] sm:$0x1] }
 0x198   : > { %s396_s26 = scalar_lea.vmem [#allocation8], %s1370_s14  ;;  %s1620_s12 = scalar_lea.vmem [#allocation10], %s1370_s14 }
 0x199   : > { %s1467_s30 = sshll.u32 %s396_s26, 4  ;;  %v615_v26 = vmul.f32 %v614_v24, %v1398_v8  ;;  %617 = vst.msk [vmem:[%s390_s22] sm:$0x1] %vm426_vm1, %v614_v24  ;;  %s1473_s0 = sshll.u32 %s1620_s12, 4  ;;  %s1504_s30 = int_to_ptr.vmem [resolvable:$true] %s1467_s30  ;;  %s1513_s0 = int_to_ptr.vmem [resolvable:$true] %s1473_s0 }
 0x19a   : > { %s630_s2 = scalar_lea.sflag [#allocation6], %s1370_s14  ;;  %s1049_s8 = scalar_lea.vmem %s1462_s13, 16 }
 0x19b   : > { %p1050_p13 = scmp.ne.s32.totalorder %s1462_s13, %s1049_s8  ;;  %s1204_s15 = smov [#allocation7]  }
 0x19c   : > { %s1053_s16 = sshll.u32 %s1204_s15, 4  ;;  %s1054_s16 = int_to_ptr.vmem [resolvable:$false] %s1053_s16 }
 0x19d   : > { %p1051_p2 = pnand %p1050_p13, %p1619_p11  ;;  %s1055_s17 = scalar_lea.vmem %s1054_s16, 32 }
 0x19e   : > { %p1056_p4 = scmp.lt.s32.totalorder %s1462_s13, %s1054_s16  ;;  %p1057_p7 = scmp.lt.s32.totalorder %s1055_s17, %s1049_s8 }
 0x19f   : > { %p1052_p5 = pneg %p1051_p2 }
 0x1a0   : > { %p1058_p10 = por %p1057_p7, %p1056_p4 }
 0x1a2   : > { %p1059_p12 = pnand %p1058_p10, %p1052_p5 }
 0x1a4   : > { %1062 = shalt.err (!%p1059_p12)
}
 0x1a5   : > { %s1063_s22 = scalar_lea.hbm %s1460_s24, 16  ;;  %s1067_s12 = scalar_lea.hbm %s1596_s5, 32 }
 0x1a6   : > { %p1064_p1 = scmp.ne.s32.totalorder %s1460_s24, %s1063_s22  ;;  %p1068_p9 = scmp.lt.u32.totalorder %s1460_s24, %s1596_s5 }
 0x1a7   : > { %p1069_p0 = scmp.lt.u32.totalorder %s1067_s12, %s1063_s22  ;;  %p1071_p13 = scmp.lt.u32.totalorder %s1063_s22, %s1460_s24 }
 0x1a8   : > { %p1065_p3 = pnand %p1064_p1, %p1619_p11 }
 0x1a9   : > { %p1070_p6 = por %p1069_p0, %p1068_p9 }
 0x1aa   : > { %p1066_p8 = pneg %p1065_p3 }
 0x1ab   : > { %p1072_p2 = por %p1071_p13, %p1070_p6 }
 0x1ad   : > { %p1073_p5 = pnand %p1072_p2, %p1066_p8 }
 0x1af   : > { %1076 = shalt.err (!%p1073_p5)
}
 0x1b0   : > { %905 = dma.vmem_to_hbm [thread:$0]  (%p1619_p11), %s1462_s13, 16, %s1460_s24, %s630_s2   ;;  %v616_v27 = vsub.f32 %v613_v25, %v615_v26 }
 0x1b1   : > { %s1501_s22 = scalar_lea.hbm %s1597_s6, %s1412_s21  ;;  %s1510_s12 = scalar_lea.hbm %s1598_s7, %s1412_s21 }
 0x1b2   : > { %618 = vst.msk [vmem:[%s396_s26] sm:$0x1] %vm426_vm1, %v616_v27  ;;  %s1520_s13 = scalar_lea.sflag [#allocation9], %s633_s1  ;;  %s1077_s24 = scalar_lea.vmem %s1504_s30, 16 }
 0x1b3   : > { %p1078_p4 = scmp.ne.s32.totalorder %s1504_s30, %s1077_s24  ;;  %s1205_s2 = smov [#allocation8]  }
 0x1b4   : > { %s1081_s15 = sshll.u32 %s1205_s2, 4  ;;  %s1082_s15 = int_to_ptr.vmem [resolvable:$false] %s1081_s15 }
 0x1b5   : > { %p1079_p7 = pnand %p1078_p4, %p1619_p11  ;;  %s1083_s16 = scalar_lea.vmem %s1082_s15, 32 }
 0x1b6   : > { %p1084_p12 = scmp.lt.s32.totalorder %s1504_s30, %s1082_s15  ;;  %p1085_p1 = scmp.lt.s32.totalorder %s1083_s16, %s1077_s24 }
 0x1b7   : > { %p1080_p10 = pneg %p1079_p7 }
 0x1b8   : > { %p1086_p3 = por %p1085_p1, %p1084_p12 }
 0x1ba   : > { %p1087_p8 = pnand %p1086_p3, %p1080_p10 }
 0x1bc   : > { %1090 = shalt.err (!%p1087_p8)
}
 0x1bd   : > { %s1091_s1 = scalar_lea.hbm %s1501_s22, 16  ;;  %s1095_s21 = scalar_lea.hbm %s1597_s6, 32 }
 0x1be   : > { %p1092_p9 = scmp.ne.s32.totalorder %s1501_s22, %s1091_s1  ;;  %p1096_p13 = scmp.lt.u32.totalorder %s1501_s22, %s1597_s6 }
 0x1bf   : > { %p1097_p2 = scmp.lt.u32.totalorder %s1095_s21, %s1091_s1  ;;  %p1099_p4 = scmp.lt.u32.totalorder %s1091_s1, %s1501_s22 }
 0x1c0   : > { %p1093_p0 = pnand %p1092_p9, %p1619_p11 }
 0x1c1   : > { %p1098_p5 = por %p1097_p2, %p1096_p13 }
 0x1c2   : > { %p1094_p6 = pneg %p1093_p0 }
 0x1c3   : > { %p1100_p7 = por %p1099_p4, %p1098_p5 }
 0x1c5   : > { %p1101_p10 = pnand %p1100_p7, %p1094_p6 }
 0x1c7   : > { %1104 = shalt.err (!%p1101_p10)
}
 0x1c8   : > { %906 = dma.vmem_to_hbm [thread:$0]  (%p1619_p11), %s1504_s30, 16, %s1501_s22, %s1520_s13  }
 0x1c9   : > { %s1105_s17 = scalar_lea.vmem %s1513_s0, 16  ;;  %s1206_s25 = smov [#allocation10]  }
 0x1ca   : > { %p1106_p12 = scmp.ne.s32.totalorder %s1513_s0, %s1105_s17  ;;  %s1109_s23 = sshll.u32 %s1206_s25, 4  ;;  %s1110_s23 = int_to_ptr.vmem [resolvable:$false] %s1109_s23 }
 0x1cb   : > { %s1111_s24 = scalar_lea.vmem %s1110_s23, 32  ;;  %p1112_p8 = scmp.lt.s32.totalorder %s1513_s0, %s1110_s23 }
 0x1cc   : > { %p1107_p1 = pnand %p1106_p12, %p1619_p11  ;;  %p1113_p9 = scmp.lt.s32.totalorder %s1111_s24, %s1105_s17 }
 0x1ce   : > { %p1108_p3 = pneg %p1107_p1  ;;  %p1114_p0 = por %p1113_p9, %p1112_p8 }
 0x1d0   : > { %p1115_p6 = pnand %p1114_p0, %p1108_p3 }
 0x1d2   : > { %1118 = shalt.err (!%p1115_p6)
}
 0x1d3   : > { %s1119_s30 = scalar_lea.hbm %s1510_s12, 16  ;;  %s1123_s15 = scalar_lea.hbm %s1598_s7, 32 }
 0x1d4   : > { %p1120_p13 = scmp.ne.s32.totalorder %s1510_s12, %s1119_s30  ;;  %p1124_p4 = scmp.lt.u32.totalorder %s1510_s12, %s1598_s7 }
 0x1d5   : > { %p1125_p7 = scmp.lt.u32.totalorder %s1123_s15, %s1119_s30  ;;  %p1127_p12 = scmp.lt.u32.totalorder %s1119_s30, %s1510_s12 }
 0x1d6   : > { %p1121_p2 = pnand %p1120_p13, %p1619_p11 }
 0x1d7   : > { %p1126_p10 = por %p1125_p7, %p1124_p4 }
 0x1d8   : > { %p1122_p5 = pneg %p1121_p2 }
 0x1d9   : > { %p1128_p1 = por %p1127_p12, %p1126_p10 }
 0x1db   : > { %p1129_p3 = pnand %p1128_p1, %p1122_p5 }
 0x1dd   : > { %1132 = shalt.err (!%p1129_p3)
}
 0x1de   : > { %907 = dma.vmem_to_hbm [thread:$0]  (%p1619_p11), %s1513_s0, 16, %s1510_s12, %s1520_s13  }
 0x1df PF: > { %s705_s11 = sand.u32 1, %s1175_s27   ;;  %p1621_p8 = scmp.ne.s32.totalorder %s1612_s20, 0 }
 0x1e0   : > { %p1622_p9 = scmp.ge.s32.totalorder %s1195_s10, 2  ;;  %s706_s14 = scalar_lea.sflag [#allocation6], %s705_s11 }
 0x1e2   : > { %p918_p0 = pnand %p1622_p9, %p1621_p8 }
 0x1e4   : > { %1162 = dma.done.wait (!%p918_p0), %s706_s14, 16  }
 0x1e5   : > { %1164 = vsyncadd (!%p918_p0), %s706_s14, 4294967280  ;;  %s1623_s21 = sadd.s32 4294967294, %s1195_s10  }
 0x1e6   : > { %s713_s26 = sand.u32 1, %s1623_s21  }
 0x1e7   : > { %s714_s8 = scalar_lea.sflag [#allocation9], %s713_s26 }
 0x1e8   : > { %1166 = dma.done.wait (!%p918_p0), %s714_s8, 32  }
 0x1e9   : > { %1168 = vsyncadd (!%p918_p0), %s714_s8, 4294967264  ;;  %s730_s18 = scalar_lea.sflag [#allocation12], %s705_s11 }
 0x1ea   : > { %1170 = dma.done.wait (!%p918_p0), %s730_s18, 16  }
 0x1eb   : > { %1172 = vsyncadd (!%p918_p0), %s730_s18, 4294967280  ;;  %s31_s10 = sadd.s32 1, %s1195_s10   ;;  %s1624_s20 = sld [smem:[#allocation17_spill]] }
 0x1ec   : > { %p28_p11 = scmp.ge.s32.totalorder %s31_s10, 4   ;;  %s1625_s27 = smov %s1179_s28 }
 0x1ed   : > { %s1626_s28 = smov %s1183_s29  ;;  %s1627_s29 = smov %s1314_s19 }
 0x1ee   : > { %s1628_s30 = smov %s1191_s9  ;;  %30 = sbr.rel (!%p28_p11) target bundleno = 15 (0xf), region = 154 }
 0x1f1   : > { %s1629_s9 = smov %s1624_s20 }
 0x1f5   :  { %734 = vsyncpa [#allocation5], 1 }
 0x1f6   :  { %736 = vsyncpa [#allocation5 + $0x1], 1 }
 0x1f7   :  { %737 = vsyncpa [#allocation6], 1 }
 0x1f8   :  { %739 = vsyncpa [#allocation6 + $0x1], 1 }
 0x1f9   :  { %740 = vsyncpa [#allocation9], 1 }
 0x1fa   :  { %742 = vsyncpa [#allocation9 + $0x1], 1 }
 0x1fb   :  { %743 = vsyncpa [#allocation12], 1 }
 0x1fc   :  { %745 = vsyncpa [#allocation12 + $0x1], 1 }

</bundles_post_ra>
